<compile_context>
chip_gen: v5e
topology: v5e:2x2
jax: 0.10.0
libtpu: 0.0.40
codegen_flags: <defaults>
</compile_context>

<pallas_src>
import jax
import jax.numpy as jnp
from jax.experimental import pallas as pl
from jax.experimental.pallas import tpu as pltpu

LN_EPS = 1e-5  # torch.nn.LayerNorm default


def _round_up(x, m):
    return ((x + m - 1) // m) * m


def postnorm_kernel(x_ref, w_ref, b_ref, gamma_ref, beta_ref, o_ref):
    # x_ref:     (tile_n, D) native dtype (f32 here) activation rows
    # w_ref:     (D, D)      bf16, already transposed so y = x @ w
    # b_ref:     (1, D)      f32
    # gamma_ref: (1, D)      f32
    # beta_ref:  (1, D)      f32
    # o_ref:     (tile_n, D) output dtype
    #
    # fn: Linear(d_model, d_model).  Cast x to bf16 *inside* the kernel (VPU
    # cast is free vs. an extra HBM round trip); MXU matmul with f32 accum.
    x_bf = x_ref[...].astype(jnp.bfloat16)
    y = jnp.dot(x_bf, w_ref[...],
                preferred_element_type=jnp.float32) + b_ref[...]

    # LayerNorm over the last axis — all math in f32.  Two-pass (centered)
    # variance kept for numerics; one-pass E[y^2]-mean^2 only pays off once
    # the kernel stops being HBM-bound (large D / bf16 I/O).
    mean = jnp.mean(y, axis=-1, keepdims=True)
    centered = y - mean
    var = jnp.mean(centered * centered, axis=-1, keepdims=True)
    inv_std = jax.lax.rsqrt(var + LN_EPS)
    o_ref[...] = (centered * inv_std * gamma_ref[...]
                  + beta_ref[...]).astype(o_ref.dtype)


def postnorm(x, w, b, gamma, beta, *, tile_n=2048):
    """PostNorm with fn = Linear(d_model, d_model): LayerNorm(x @ w + b).

    x: (B, S, D); w: (D, D) stored so that y = x @ w; b/gamma/beta: (D,).
    """
    B, S, D = x.shape
    N = B * S
    out_dtype = x.dtype

    # ---- wrapper-side plumbing (no activation copies) ----------------------
    x2 = x.reshape(N, D)                          # view-like reshape, no cast, no pad
    w_bf = w.astype(jnp.bfloat16)                 # tiny, resident in VMEM
    b2 = b.reshape(1, D).astype(jnp.float32)
    g2 = gamma.reshape(1, D).astype(jnp.float32)
    be2 = beta.reshape(1, D).astype(jnp.float32)

    # ---- row tiling ---------------------------------------------------------
    # Big tiles amortize the ~0.35us/grid-step overhead and keep the pipeline
    # DMA-limited.  x stays f32 -> 8-row sublane granularity is native.
    tile_n = int(tile_n)
    if tile_n >= N:
        tile_n = N                                 # single full block
    else:
        tile_n = max(8, (tile_n // 8) * 8)

    n_steps = pl.cdiv(N, tile_n)
    # v7x megacore: keep an even number of steps (>1) so both TensorCores get
    # equal work on the "parallel" axis.  Pure heuristic; tail block stays OK.
    if n_steps > 1 and n_steps % 2 == 1:
        tile_n = max(8, _round_up(pl.cdiv(N, n_steps + 1), 8))
        n_steps = pl.cdiv(N, tile_n)

    grid = (n_steps,)

    # ---- VMEM budget: real need x1.5, never the whole v7x VMEM -------------
    in_bytes = jnp.dtype(x2.dtype).itemsize
    out_bytes = jnp.dtype(out_dtype).itemsize
    pipeline_bytes = 2 * (tile_n * D * (in_bytes + out_bytes)   # x/out, double-buffered
                          + D * D * 2                           # resident bf16 weight
                          + 3 * D * 4)                          # LN params
    kernel_tmp_bytes = 6 * tile_n * D * 4                       # f32 intermediates (generous)
    vmem_limit = int(1.5 * (pipeline_bytes + kernel_tmp_bytes))
    vmem_limit = min(max(vmem_limit, 16 * 1024 * 1024), 48 * 1024 * 1024)

    cost = pl.CostEstimate(
        flops=2 * N * D * D + 10 * N * D,
        transcendentals=N,  # one rsqrt per row
        bytes_accessed=(N * D * in_bytes            # x read (native dtype)
                        + D * D * 2                 # bf16 weight
                        + 3 * D * 4                 # bias / gamma / beta
                        + N * D * out_bytes),       # output
    )

    out2 = pl.pallas_call(
        postnorm_kernel,
        out_shape=jax.ShapeDtypeStruct((N, D), out_dtype),
        grid_spec=pltpu.PrefetchScalarGridSpec(
            num_scalar_prefetch=0,
            grid=grid,
            in_specs=[
                pl.BlockSpec((tile_n, D), lambda i: (i, 0)),  # x rows (native dtype)
                pl.BlockSpec((D, D), lambda i: (0, 0)),       # weight (resident, bf16)
                pl.BlockSpec((1, D), lambda i: (0, 0)),       # bias
                pl.BlockSpec((1, D), lambda i: (0, 0)),       # gamma
                pl.BlockSpec((1, D), lambda i: (0, 0)),       # beta
            ],
            out_specs=pl.BlockSpec((tile_n, D), lambda i: (i, 0)),
        ),
        compiler_params=pltpu.CompilerParams(
            dimension_semantics=("parallel",),
            vmem_limit_bytes=vmem_limit,
        ),
        cost_estimate=cost,
    )(x2, w_bf, b2, g2, be2)

    return out2.reshape(B, S, D)


def postnorm_ref(x, w, b, gamma, beta, matmul_dtype=None):
    if matmul_dtype is not None:
        y = jnp.einsum("bsd,de->bse",
                       x.astype(matmul_dtype), w.astype(matmul_dtype),
                       preferred_element_type=jnp.float32) + b
    else:
        y = jnp.einsum("bsd,de->bse", x, w) + b
    mean = jnp.mean(y, axis=-1, keepdims=True)
    var = jnp.mean((y - mean) ** 2, axis=-1, keepdims=True)
    return (y - mean) * jax.lax.rsqrt(var + LN_EPS) * gamma + beta


if __name__ == "__main__":
    key = jax.random.PRNGKey(0)
    # batch, seq, d_model — D lane-dense (multiple of 128) for unmasked stores.
    B, S, D = 2, 8, 128

    kx, kw, kb = jax.random.split(key, 3)
    x = jax.random.normal(kx, (B, S, D), dtype=jnp.float32)

    # fn = Linear(d_model, d_model): stored pre-transposed so the kernel
    # computes x @ w.
    w = jax.random.normal(kw, (D, D), dtype=jnp.float32) * (1.0 / jnp.sqrt(D))
    b = jax.random.normal(kb, (D,), dtype=jnp.float32) * 0.02

    # LayerNorm params: torch default init (ones / zeros)
    gamma = jnp.ones((D,), dtype=jnp.float32)
    beta = jnp.zeros((D,), dtype=jnp.float32)

    out = jax.block_until_ready(postnorm(x, w, b, gamma, beta))
    assert out.shape == (B, S, D)

    # Tight check: reference with identical numerics (bf16 matmul, f32 LN).
    ref_bf = postnorm_ref(x, w, b, gamma, beta, matmul_dtype=jnp.bfloat16)
    err_bf = jnp.max(jnp.abs(out - ref_bf))
    assert jnp.allclose(out, ref_bf, atol=1e-3, rtol=1e-3), f"bf16-ref max err {err_bf}"

    # Loose check against the pure-f32 (torch-equivalent) reference; bf16 MXU
    # operands introduce ~1e-2-level differences at D=128.
    ref_f32 = postnorm_ref(x, w, b, gamma, beta)
    err_f32 = jnp.max(jnp.abs(out - ref_f32))
    assert jnp.allclose(out, ref_f32, atol=3e-2, rtol=3e-2), f"f32-ref max err {err_f32}"

    print("KERNEL_OK")
</pallas_src>

<mosaic_0001>
module attributes {stable_mosaic.version = 11 : i64} {
  func.func @postnorm_kernel(%arg0: i32, %arg1: memref<16x128xf32, #tpu.memory_space<vmem>>, %arg2: memref<128x128xbf16, #tpu.memory_space<vmem>>, %arg3: memref<1x128xf32, #tpu.memory_space<vmem>>, %arg4: memref<1x128xf32, #tpu.memory_space<vmem>>, %arg5: memref<1x128xf32, #tpu.memory_space<vmem>>, %arg6: memref<16x128xf32, #tpu.memory_space<vmem>>) attributes {dimension_semantics = [#tpu.dimension_semantics<parallel>], iteration_bounds = array<i64: 1>, scalar_prefetch = 0 : i64, scratch_operands = 0 : i64, tpu.core_type = #tpu.core_type<tc>, window_params = [{transform_indices = @transform_0, window_bounds = array<i64: 16, 128>}, {pipeline_mode = #tpu.pipeline_mode<synchronous>, transform_indices = @transform_1, window_bounds = array<i64: 128, 128>}, {pipeline_mode = #tpu.pipeline_mode<synchronous>, transform_indices = @transform_2, window_bounds = array<i64: 1, 128>}, {pipeline_mode = #tpu.pipeline_mode<synchronous>, transform_indices = @transform_3, window_bounds = array<i64: 1, 128>}, {pipeline_mode = #tpu.pipeline_mode<synchronous>, transform_indices = @transform_4, window_bounds = array<i64: 1, 128>}, {transform_indices = @transform_5, window_bounds = array<i64: 16, 128>}]} {
    %c0 = arith.constant 0 : index
    %c0_0 = arith.constant 0 : index
    %0 = vector.load %arg1[%c0, %c0_0] : memref<16x128xf32, #tpu.memory_space<vmem>>, vector<16x128xf32>
    %1 = arith.truncf %0 : vector<16x128xf32> to vector<16x128xbf16>
    %c0_1 = arith.constant 0 : index
    %c0_2 = arith.constant 0 : index
    %2 = vector.load %arg2[%c0_1, %c0_2] : memref<128x128xbf16, #tpu.memory_space<vmem>>, vector<128x128xbf16>
    %cst = arith.constant dense<0.000000e+00> : vector<16x128xf32>
    %3 = tpu.matmul %1, %2, %cst {dimension_numbers = #tpu.dot_dimension_numbers<[1], [0], [0], [1], [0, 0, 1, 1], [], []>} : vector<16x128xbf16>, vector<128x128xbf16>, vector<16x128xf32> -> vector<16x128xf32>
    %c0_3 = arith.constant 0 : index
    %c0_4 = arith.constant 0 : index
    %4 = vector.load %arg3[%c0_3, %c0_4] : memref<1x128xf32, #tpu.memory_space<vmem>>, vector<1x128xf32>
    %5 = vector.broadcast %4 : vector<1x128xf32> to vector<16x128xf32>
    %6 = arith.addf %3, %5 : vector<16x128xf32>
    %cst_5 = arith.constant dense<0.000000e+00> : vector<16xf32>
    %7 = vector.multi_reduction <add>, %6, %cst_5 [1] : vector<16x128xf32> to vector<16xf32>
    %8 = vector.shape_cast %7 : vector<16xf32> to vector<16x1xf32>
    %cst_6 = arith.constant 1.280000e+02 : f32
    %9 = vector.broadcast %cst_6 : f32 to vector<16x1xf32>
    %10 = arith.divf %8, %9 : vector<16x1xf32>
    %11 = vector.broadcast %10 : vector<16x1xf32> to vector<16x128xf32>
    %12 = arith.subf %6, %11 : vector<16x128xf32>
    %13 = arith.mulf %12, %12 : vector<16x128xf32>
    %cst_7 = arith.constant dense<0.000000e+00> : vector<16xf32>
    %14 = vector.multi_reduction <add>, %13, %cst_7 [1] : vector<16x128xf32> to vector<16xf32>
    %15 = vector.shape_cast %14 : vector<16xf32> to vector<16x1xf32>
    %cst_8 = arith.constant 1.280000e+02 : f32
    %16 = vector.broadcast %cst_8 : f32 to vector<16x1xf32>
    %17 = arith.divf %15, %16 : vector<16x1xf32>
    %cst_9 = arith.constant 9.99999974E-6 : f32
    %18 = vector.broadcast %cst_9 : f32 to vector<16x1xf32>
    %19 = arith.addf %17, %18 : vector<16x1xf32>
    %20 = math.rsqrt %19 : vector<16x1xf32>
    %21 = vector.broadcast %20 : vector<16x1xf32> to vector<16x128xf32>
    %22 = arith.mulf %12, %21 : vector<16x128xf32>
    %c0_10 = arith.constant 0 : index
    %c0_11 = arith.constant 0 : index
    %23 = vector.load %arg4[%c0_10, %c0_11] : memref<1x128xf32, #tpu.memory_space<vmem>>, vector<1x128xf32>
    %24 = vector.broadcast %23 : vector<1x128xf32> to vector<16x128xf32>
    %25 = arith.mulf %22, %24 : vector<16x128xf32>
    %c0_12 = arith.constant 0 : index
    %c0_13 = arith.constant 0 : index
    %26 = vector.load %arg5[%c0_12, %c0_13] : memref<1x128xf32, #tpu.memory_space<vmem>>, vector<1x128xf32>
    %27 = vector.broadcast %26 : vector<1x128xf32> to vector<16x128xf32>
    %28 = arith.addf %25, %27 : vector<16x128xf32>
    %c0_14 = arith.constant 0 : index
    %c0_15 = arith.constant 0 : index
    %29 = vector.load %arg6[%c0_14, %c0_15] : memref<16x128xf32, #tpu.memory_space<vmem>>, vector<16x128xf32>
    tpu.vector_store %arg6[%c0_14, %c0_15], %28 {strides = array<i32>} : memref<16x128xf32, #tpu.memory_space<vmem>>, vector<16x128xf32>,
    return
  }
  func.func @transform_0(%arg0: i32) -> (i32, i32) {
    %c0_i32 = arith.constant 0 : i32
    %c0_i32_0 = arith.constant 0 : i32
    return %arg0, %c0_i32 : i32, i32
  }
  func.func @transform_1(%arg0: i32) -> (i32, i32) {
    %c0_i32 = arith.constant 0 : i32
    %c0_i32_0 = arith.constant 0 : i32
    %c0_i32_1 = arith.constant 0 : i32
    return %c0_i32, %c0_i32_0 : i32, i32
  }
  func.func @transform_2(%arg0: i32) -> (i32, i32) {
    %c0_i32 = arith.constant 0 : i32
    %c0_i32_0 = arith.constant 0 : i32
    %c0_i32_1 = arith.constant 0 : i32
    return %c0_i32, %c0_i32_0 : i32, i32
  }
  func.func @transform_3(%arg0: i32) -> (i32, i32) {
    %c0_i32 = arith.constant 0 : i32
    %c0_i32_0 = arith.constant 0 : i32
    %c0_i32_1 = arith.constant 0 : i32
    return %c0_i32, %c0_i32_0 : i32, i32
  }
  func.func @transform_4(%arg0: i32) -> (i32, i32) {
    %c0_i32 = arith.constant 0 : i32
    %c0_i32_0 = arith.constant 0 : i32
    %c0_i32_1 = arith.constant 0 : i32
    return %c0_i32, %c0_i32_0 : i32, i32
  }
  func.func @transform_5(%arg0: i32) -> (i32, i32) {
    %c0_i32 = arith.constant 0 : i32
    %c0_i32_0 = arith.constant 0 : i32
    return %arg0, %c0_i32 : i32, i32
  }
}

</mosaic_0001>

<bundles_post_ra>
// kernel: tpu_custom_call.1
= control target key start
LH: loop header
LB: loop body
LE: loop exit
PB: predicated region body
PF: predicated region fallthrough
CT: control target
= control target key end

     0   :  { %10 = vsyncpa [#allocation3], 0  ;;  %s416_s0 = inlined_call_operand.hbm [shape: f32[16,128], index: 0, kind: input, shape index: {}]   ;;  %s417_s1 = inlined_call_operand.hbm [shape: bf16[128,128], index: 1, kind: input, shape index: {}]   ;;  %s418_s2 = inlined_call_operand.vmem [shape: f32[1,128], index: 2, kind: input, shape index: {}]   ;;  %s419_s3 = inlined_call_operand.vmem [shape: f32[1,128], index: 3, kind: input, shape index: {}]   ;;  %s420_s4 = inlined_call_operand.vmem [shape: f32[1,128], index: 4, kind: input, shape index: {}]   ;;  %s421_s5 = inlined_call_operand.hbm [shape: f32[16,128], index: 5, kind: output, shape index: {}]  }
   0x1   :  { %11 = vsyncpa [#allocation6], 0 }
   0x2   :  { %12 = vsyncpa [#allocation4], 0  ;;  %s17_s20 = sshll.u32 %s416_s0, 4  ;;  %s354_s21 = smov [#allocation2]   ;;  %s18_s20 = int_to_ptr.hbm [resolvable:$true] %s17_s20 }
   0x3   :  { %s19_s22 = sshll.u32 %s354_s21, 4  ;;  %s30_s25 = sshll.u32 %s417_s1, 4  ;;  %s20_s22 = int_to_ptr.vmem [resolvable:$true] %s19_s22  ;;  %s31_s25 = int_to_ptr.hbm [resolvable:$true] %s30_s25 }
   0x4   :  { %s355_s26 = smov 128   ;;  %s356_s27 = smov 8  }
   0x5   :  { %25 = dma.hbm_to_vmem [thread:$0]  %s18_s20, 256, %s20_s22, [#allocation3], %s355_s26, %s355_s26, %s356_s27  }
   0x6   :  { %s357_s28 = smov [#allocation5]   ;;  %s358_s30 = smov 64  }
   0x7   :  { %s32_s29 = sshll.u32 %s357_s28, 4  ;;  %s359_s0 = smov 4   ;;  %s33_s29 = int_to_ptr.vmem [resolvable:$true] %s32_s29 }
   0x8   :  { %38 = dma.hbm_to_vmem [thread:$0]  %s31_s25, 1024, %s33_s29, [#allocation6], %s358_s30, %s358_s30, %s359_s0  }
   0x9   :  { %348 = dma.done.wait [#allocation3], 256  }
   0xa   :  { %349 = vsyncadd [#allocation3], 4294967040 }
   0xb   :  { %350 = dma.done.wait [#allocation6], 1024  }
   0xc   :  { %351 = vsyncadd [#allocation6], 4294966272  ;;  %v258_v0 = vld [vmem:[#allocation5 + $0x38] sm:$0xff]  ;;  %v257_v1 = vld [vmem:[#allocation5 + $0x30] sm:$0xff]  ;;  %v360_v16 = vmov 128.0   ;;  %s361_s10 = smov [#allocation7]  }
   0xd   :  { %124 = vmatpush.bf16.msra.mxu0 %v258_v0  ;;  %v256_v2 = vld [vmem:[#allocation5 + $0x28] sm:$0xff]  ;;  %v255_v3 = vld [vmem:[#allocation5 + $0x20] sm:$0xff]  ;;  %v254_v4 = vld [vmem:[#allocation5 + $0x18] sm:$0xff]  ;;  %270 = vrcp.f32 %v360_v16  ;;  %s205_s13 = sshll.u32 %s421_s5, 4  ;;  %s206_s13 = int_to_ptr.hbm [resolvable:$true] %s205_s13 }
   0xe   :  { %v253_v5 = vld [vmem:[#allocation5 + $0x10] sm:$0xff]  ;;  %v252_v6 = vld [vmem:[#allocation5 + $0x8] sm:$0xff]  ;;  %v251_v7 = vld [vmem:[#allocation5] sm:$0xff] }
   0xf   :  { %v53_v8 = vld [vmem:[#allocation2] sm:$0xff]  ;;  %v54_v9 = vld [vmem:[#allocation2 + $0x8] sm:$0xff] }
  0x10   :  { %v55_v10 = vpack.c.bf16 %v54_v9, %v53_v8  ;;  %v267_v11 = vld [vmem:[%s418_s2] ss:$0 sm:$0xff] }
  0x11   :  { %125 = vmatpush.bf16.msra.mxu0 %v257_v1  ;;  %v268_v45 = vld [vmem:[%s419_s3] ss:$0 sm:$0xff]  ;;  %s203_s3 = sshll.u32 %s361_s10, 4  ;;  %s204_s3 = int_to_ptr.vmem [resolvable:$true] %s203_s3 }
  0x12   :  { %v269_v49 = vld [vmem:[%s420_s4] ss:$0 sm:$0xff] }
  0x13   :  { %v271_v17 = vpop.eup %270 }
  0x14   :  { %v143_v18 = vmul.f32 128.0, %v271_v17  ;;  %vm147_vm0 = vweird.f32 %v271_v17 }
  0x15   :  { %126 = vmatpush.bf16.msra.mxu0 %v256_v2 }
  0x16   :  { %v144_v19 = vsub.f32 1.0, %v143_v18 }
  0x18   :  { %v145_v20 = vmul.f32 %v271_v17, %v144_v19 }
  0x19   :  { %127 = vmatpush.bf16.msra.mxu0 %v255_v3 }
  0x1a   :  { %v146_v21 = vadd.f32 %v271_v17, %v145_v20 }
  0x1c   :  { %v148_v22 = vsel %vm147_vm0, %v271_v17, %v146_v21 }
  0x1d   :  { %128 = vmatpush.bf16.msra.mxu0 %v254_v4 }
  0x21   :  { %129 = vmatpush.bf16.msra.mxu0 %v253_v5 }
  0x25   :  { %130 = vmatpush.bf16.msra.mxu0 %v252_v6 }
  0x29   :  { %131 = vmatpush.bf16.msra.mxu0 %v251_v7 }
  0x2c   :  { %132 = vmatmul.bf16.vlgmr.msra.gmra.mxu0 %v55_v10 }
  0xa9   :  { %v133_v12 = vpop.f32.mrf.mxu0 }
  0xaa   :  { %v134_v13 = vadd.f32 %v267_v11, %v133_v12 }
  0xac   :  { %138 = vadd.xlane.f32.xlu0 %v134_v13 }
  0xb1   :  { %v135_v14 = vpop.f32.mrf.mxu0 }
  0xb2   :  { %v136_v15 = vadd.f32 %v267_v11, %v135_v14 }
  0xb4   :  { %140 = vadd.xlane.f32.xlu0 %v136_v15 }
 0x11f   :  { %v139_v23 = vpop.xlane.xlu0 %138 }
 0x120   :  { %v149_v24 = vmul.f32 %v148_v22, %v139_v23 }
 0x122   :  { %v151_v25 = vsub.f32 %v134_v13, %v149_v24 }
 0x124   :  { %v153_v26 = vmul.f32 %v151_v25, %v151_v25 }
 0x126   :  { %155 = vadd.xlane.f32.xlu1 %v153_v26 }
 0x127   :  { %v141_v27 = vpop.xlane.xlu0 %140 }
 0x128   :  { %v150_v28 = vmul.f32 %v148_v22, %v141_v27 }
 0x12a   :  { %v152_v29 = vsub.f32 %v136_v15, %v150_v28 }
 0x12c   :  { %v154_v30 = vmul.f32 %v152_v29, %v152_v29 }
 0x12e   :  { %157 = vadd.xlane.f32.xlu1 %v154_v30 }
 0x199   :  { %v156_v31 = vpop.xlane.xlu1 %155 }
 0x19a   :  { %v159_v32 = vmul.f32 %v156_v31, %v148_v22 }
 0x19c   :  { %v161_v33 = vadd.f32 1e-05, %v159_v32 }
 0x19e   :  { %272 = vrsqrt.f32 %v161_v33  ;;  %vm169_vm2 = vweird.f32 %v161_v33 }
 0x1a1   :  { %v158_v34 = vpop.xlane.xlu1 %157 }
 0x1a2   :  { %v160_v35 = vmul.f32 %v158_v34, %v148_v22 }
 0x1a4   :  { %v273_v36 = vpop.eup %272  ;;  %v162_v37 = vadd.f32 1e-05, %v160_v35 }
 0x1a5   :  { %v164_v38 = vmul.f32 %v273_v36, %v161_v33  ;;  %vm170_vm1 = vweird.f32 %v273_v36 }
 0x1a6   :  { %274 = vrsqrt.f32 %v162_v37  ;;  %vm171_vm3 = vmor %vm169_vm2, %vm170_vm1  ;;  %vm179_vm5 = vweird.f32 %v162_v37 }
 0x1a7   :  { %v165_v39 = vmul.f32 %v273_v36, %v164_v38 }
 0x1a9   :  { %v166_v40 = vmul.f32 0.5, %v165_v39 }
 0x1ab   :  { %v167_v41 = vsub.f32 1.5, %v166_v40 }
 0x1ac   :  { %v275_v42 = vpop.eup %274 }
 0x1ad   :  { %v168_v43 = vmul.f32 %v273_v36, %v167_v41  ;;  %v174_v44 = vmul.f32 %v275_v42, %v162_v37  ;;  %vm180_vm4 = vweird.f32 %v275_v42 }
 0x1ae   :  { %vm181_vm6 = vmor %vm179_vm5, %vm180_vm4 }
 0x1af   :  { %v172_v46 = vsel %vm171_vm3, %v273_v36, %v168_v43  ;;  %v175_v47 = vmul.f32 %v275_v42, %v174_v44 }
 0x1b0   :  { %v183_v48 = vmul.f32 %v172_v46, %v151_v25 }
 0x1b1   :  { %v176_v50 = vmul.f32 0.5, %v175_v47 }
 0x1b2   :  { %v189_v51 = vmul.f32 %v268_v45, %v183_v48 }
 0x1b3   :  { %v177_v52 = vsub.f32 1.5, %v176_v50 }
 0x1b4   :  { %v195_v53 = vadd.f32 %v269_v49, %v189_v51 }
 0x1b5   :  { %v178_v54 = vmul.f32 %v275_v42, %v177_v52 }
 0x1b6   :  { %197 = vst [vmem:[#allocation7] sm:$0xff] %v195_v53 }
 0x1b7   :  { %v182_v55 = vsel %vm181_vm6, %v275_v42, %v178_v54 }
 0x1b8   :  { %v184_v56 = vmul.f32 %v182_v55, %v152_v29 }
 0x1ba   :  { %v190_v57 = vmul.f32 %v268_v45, %v184_v56 }
 0x1bc   :  { %v196_v58 = vadd.f32 %v269_v49, %v190_v57 }
 0x1be   :  { %198 = vst [vmem:[#allocation7 + $0x8] sm:$0xff] %v196_v58 }
 0x1bf   :  { %211 = dma.vmem_to_hbm [thread:$0]  %s204_s3, 256, %s206_s13, [#allocation4], %s355_s26, %s355_s26, %s356_s27  }
 0x1c0   :  { %352 = dma.done.wait [#allocation4], 256  }
 0x1c1   :  { %353 = vsyncadd [#allocation4], 4294967040 }
 0x1c2   :  { %216 = vsyncpa [#allocation3], 1 }
 0x1c3   :  { %217 = vsyncpa [#allocation6], 1 }
 0x1c4   :  { %218 = vsyncpa [#allocation4], 1 }

</bundles_post_ra>
